<compile_context>
chip_gen: v6e
topology: v6e:2x2x1
jax: 0.10.0
libtpu: 0.0.40
codegen_flags: <defaults>
</compile_context>

<pallas_src>
import functools

import jax
import jax.numpy as jnp
from jax.experimental import pallas as pl
from jax.experimental.pallas import tpu as pltpu

BN_EPS = 1e-5
NUM_ATOM_FEATS, ATOM_VOCAB = 9, 5
NUM_BOND_FEATS, BOND_VOCAB = 3, 4
LANE = 128

_VMEM = pl.BlockSpec(memory_space=pltpu.MemorySpace.VMEM)
_SMEM = pl.BlockSpec(memory_space=pltpu.MemorySpace.SMEM)


def _round_up(x, m):
    return (x + m - 1) // m * m


# --------------------------------------------------------------------------
# Pallas kernels
# --------------------------------------------------------------------------
def _gine_layer_kernel(add_virtual, apply_relu,
                       src_ref, dst_ref, bat_n1_ref, bat_1n_ref,
                       x_ref, eemb_ref, vfeat_ref,
                       w1_ref, b1_ref, s1_ref, t1_ref,
                       w2_ref, b2_ref, so_ref, to_ref, eps_ref,
                       out_ref, pool_ref):
    """One fully-fused GINEConv layer.

    Fuses: (optional) virtual-node add, GINE message passing (gather +
    scatter-add through in-vreg one-hot selections on the MXU), the conv MLP
    (Linear -> BN(eval) -> ReLU -> Linear), the encoder's outer BatchNorm1d,
    the (optional) post-layer ReLU, and global_add_pool of the layer output.
    """
    N, E, G = x_ref.shape[0], eemb_ref.shape[0], vfeat_ref.shape[0]

    x = x_ref[...]
    if add_virtual:
        # x += vfeat[batch] : [N, G] one-hot select of the per-graph virtual node
        vsel = jnp.where(
            jax.lax.broadcasted_iota(jnp.int32, (N, G), 1) == bat_n1_ref[...],
            1.0, 0.0)
        x = x + jnp.dot(vsel, vfeat_ref[...], preferred_element_type=jnp.float32)

    # message: relu(x[src] + edge_emb); gather via in-vreg one-hot (MXU matmul)
    gsel = jnp.where(
        jax.lax.broadcasted_iota(jnp.int32, (E, N), 1) == src_ref[...], 1.0, 0.0)
    xj = jnp.dot(gsel, x, preferred_element_type=jnp.float32)
    mess = jnp.maximum(xj + eemb_ref[...], 0.0)

    # sum-aggregate messages at destination nodes (scatter-add as MXU matmul)
    ssel = jnp.where(
        jax.lax.broadcasted_iota(jnp.int32, (N, E), 0) == dst_ref[...], 1.0, 0.0)
    aggr = jnp.dot(ssel, mess, preferred_element_type=jnp.float32)

    h = (1.0 + eps_ref[0, 0]) * x + aggr
    # GINE mlp: Linear(D,2D) -> BatchNorm1d(eval) -> ReLU -> Linear(2D,D)
    h1 = jnp.dot(h, w1_ref[...], preferred_element_type=jnp.float32) + b1_ref[...]
    h1 = jnp.maximum(h1 * s1_ref[...] + t1_ref[...], 0.0)
    h2 = jnp.dot(h1, w2_ref[...], preferred_element_type=jnp.float32) + b2_ref[...]
    # outer BatchNorm1d (eval) of vGINMolHeadEncoder + optional post-layer ReLU
    out = h2 * so_ref[...] + to_ref[...]
    if apply_relu:
        out = jnp.maximum(out, 0.0)
    out_ref[...] = out

    # global_add_pool(out, batch), computed while `out` is still in VMEM
    psel = jnp.where(
        jax.lax.broadcasted_iota(jnp.int32, (G, N), 0) == bat_1n_ref[...], 1.0, 0.0)
    pool_ref[...] = jnp.dot(psel, out, preferred_element_type=jnp.float32)


def gine_layer(x, edge_emb, vfeat, src_e1, dst_1e, bat_n1, bat_1n, p,
               *, add_virtual, apply_relu):
    N, Dp = x.shape
    G = vfeat.shape[0]
    args = (src_e1, dst_1e, bat_n1, bat_1n, x, edge_emb, vfeat,
            p["w1"], p["b1"], p["s1"], p["t1"],
            p["w2"], p["b2"], p["so"], p["to"], p["eps"])
    # TODO(synk): for large graphs, grid over node/edge row tiles (parallel
    # dimension_semantics, scalar-prefetch index maps) instead of whole-array
    # VMEM residency; at this config everything is a few hundred KiB.
    return pl.pallas_call(
        functools.partial(_gine_layer_kernel, add_virtual, apply_relu),
        out_shape=(jax.ShapeDtypeStruct((N, Dp), jnp.float32),
                   jax.ShapeDtypeStruct((G, Dp), jnp.float32)),
        in_specs=[_VMEM] * (len(args) - 1) + [_SMEM],
        out_specs=(_VMEM, _VMEM),
    )(*args)


def _virtual_mlp_kernel(pooled_ref, vfeat_ref,
                        w1_ref, b1_ref, s1_ref, t1_ref,
                        w2_ref, b2_ref, s2_ref, t2_ref,
                        out_ref):
    """virtual_mlp(pooled + virtual_node_feat); `pooled` is produced by the
    GINE kernel so the [N, D] node tensor is never re-read from HBM here."""
    z = pooled_ref[...] + vfeat_ref[...]
    h1 = jnp.dot(z, w1_ref[...], preferred_element_type=jnp.float32) + b1_ref[...]
    h1 = jnp.maximum(h1 * s1_ref[...] + t1_ref[...], 0.0)
    h2 = jnp.dot(h1, w2_ref[...], preferred_element_type=jnp.float32) + b2_ref[...]
    # TODO(synk): trailing nn.Dropout() in virtual_mlp treated as identity (eval mode).
    out_ref[...] = jnp.maximum(h2 * s2_ref[...] + t2_ref[...], 0.0)


def virtual_mlp(pooled, vfeat, p):
    G, Dp = vfeat.shape
    args = (pooled, vfeat, p["w1"], p["b1"], p["s1"], p["t1"],
            p["w2"], p["b2"], p["s2"], p["t2"])
    return pl.pallas_call(
        _virtual_mlp_kernel,
        out_shape=jax.ShapeDtypeStruct((G, Dp), jnp.float32),
        in_specs=[_VMEM] * len(args),
        out_specs=_VMEM,
    )(*args)


# --------------------------------------------------------------------------
# Deterministic parameter construction (synthetic, matches module shapes),
# zero-padded to lane-dense widths so padded lanes stay exactly zero.
# --------------------------------------------------------------------------
def _linear(key, din, dout):
    kw, kb = jax.random.split(key)
    lim = 1.0 / jnp.sqrt(din)
    w = jax.random.uniform(kw, (din, dout), jnp.float32, -lim, lim)
    b = jax.random.uniform(kb, (1, dout), jnp.float32, -lim, lim)
    return w, b


def _bn_affine(key, dim):
    # eval-mode BatchNorm1d with running_mean=0, running_var=1 folded to affine
    kg, kb = jax.random.split(key)
    gamma = 1.0 + 0.1 * jax.random.normal(kg, (dim,), jnp.float32)
    beta = 0.1 * jax.random.normal(kb, (dim,), jnp.float32)
    scale = gamma / jnp.sqrt(1.0 + BN_EPS)
    shift = beta
    return scale[None, :], shift[None, :]


def _pad2(a, rows, cols):
    return jnp.pad(a, ((0, rows - a.shape[0]), (0, cols - a.shape[1])))


def init_gine_params(key, emb_dim, dp, hp):
    ks = jax.random.split(key, 5)
    w1, b1 = _linear(ks[0], emb_dim, 2 * emb_dim)
    s1, t1 = _bn_affine(ks[1], 2 * emb_dim)
    w2, b2 = _linear(ks[2], 2 * emb_dim, emb_dim)
    so, to = _bn_affine(ks[3], emb_dim)           # encoder's outer BatchNorm1d
    bond_tables = [
        _pad2(0.1 * jax.random.normal(k, (BOND_VOCAB, emb_dim), jnp.float32),
              BOND_VOCAB, dp)
        for k in jax.random.split(ks[4], NUM_BOND_FEATS)]
    eps = jnp.zeros((1, 1), jnp.float32)          # torch init: GINEConv.eps = 0
    return dict(
        w1=_pad2(w1, dp, hp), b1=_pad2(b1, 1, hp),
        s1=_pad2(s1, 1, hp), t1=_pad2(t1, 1, hp),
        w2=_pad2(w2, hp, dp), b2=_pad2(b2, 1, dp),
        so=_pad2(so, 1, dp), to=_pad2(to, 1, dp),
        eps=eps, bond_tables=bond_tables)


def init_virtual_mlp_params(key, emb_dim, dp, hp):
    ks = jax.random.split(key, 4)
    w1, b1 = _linear(ks[0], emb_dim, 2 * emb_dim)
    s1, t1 = _bn_affine(ks[1], 2 * emb_dim)
    w2, b2 = _linear(ks[2], 2 * emb_dim, emb_dim)
    s2, t2 = _bn_affine(ks[3], emb_dim)
    return dict(w1=_pad2(w1, dp, hp), b1=_pad2(b1, 1, hp),
                s1=_pad2(s1, 1, hp), t1=_pad2(t1, 1, hp),
                w2=_pad2(w2, hp, dp), b2=_pad2(b2, 1, dp),
                s2=_pad2(s2, 1, dp), t2=_pad2(t2, 1, dp))


def init_params(key, num_layer, emb_dim, num_graphs):
    dp = _round_up(emb_dim, LANE)
    hp = _round_up(2 * emb_dim, LANE)
    ks = jax.random.split(key, num_layer + 3)
    atom_tables = [
        _pad2(0.1 * jax.random.normal(k, (ATOM_VOCAB, emb_dim), jnp.float32),
              ATOM_VOCAB, dp)
        for k in jax.random.split(ks[0], NUM_ATOM_FEATS)]
    virtual_node_emb = _pad2(
        0.1 * jax.random.normal(ks[1], (1, emb_dim), jnp.float32), 1, dp)
    convs = [init_gine_params(ks[2 + i], emb_dim, dp, hp) for i in range(num_layer)]
    vmlp = init_virtual_mlp_params(ks[2 + num_layer], emb_dim, dp, hp)
    return dict(num_layer=num_layer, emb_dim=emb_dim, emb_dim_p=dp,
                num_graphs=num_graphs, atom_tables=atom_tables,
                virtual_node_emb=virtual_node_emb, convs=convs, virtual_mlp=vmlp)


# --------------------------------------------------------------------------
# Forward pass (glue in plain JAX, hot path in the Pallas kernels above)
# --------------------------------------------------------------------------
def multi_embed(tables, idx):
    out = jnp.zeros((idx.shape[0], tables[0].shape[1]), jnp.float32)
    for f, tab in enumerate(tables):
        out = out + jnp.take(tab, idx[:, f], axis=0)
    return out


def vgin_mol_head_encoder(x_int, edge_index, edge_attr, batch, params):
    num_layer = params["num_layer"]
    D = params["emb_dim"]
    Dp = params["emb_dim_p"]
    G = params["num_graphs"]                      # == batch[-1] + 1

    # Raw int32 indices only; the kernels build selection matrices in vregs.
    src_e1 = edge_index[0].astype(jnp.int32)[:, None]      # [E, 1] gather idx
    dst_1e = edge_index[1].astype(jnp.int32)[None, :]      # [1, E] scatter idx
    bat_n1 = batch.astype(jnp.int32)[:, None]               # [N, 1]
    bat_1n = batch.astype(jnp.int32)[None, :]               # [1, N]

    # virtual node embedding for every graph (row 0 of a 1-row table)
    vfeat = jnp.broadcast_to(params["virtual_node_emb"], (G, Dp))

    # AtomEncoder: sum of per-feature embedding lookups
    x = multi_embed(params["atom_tables"], x_int)

    convs = params["convs"]
    # layer 1: dropout(relu(batch_norm1(conv1(x))))  (dropout == identity, eval)
    edge_emb = multi_embed(convs[0]["bond_tables"], edge_attr)
    post_conv, _pooled = gine_layer(
        x, edge_emb, vfeat, src_e1, dst_1e, bat_n1, bat_1n, convs[0],
        add_virtual=False, apply_relu=True)

    n_rest = num_layer - 1
    for i in range(n_rest):
        p = convs[i + 1]
        edge_emb = multi_embed(p["bond_tables"], edge_attr)
        # virtual-node add, conv, BN, (relu), and pool all fused in one kernel
        post_conv, pooled = gine_layer(
            post_conv, edge_emb, vfeat, src_e1, dst_1e, bat_n1, bat_1n, p,
            add_virtual=True, apply_relu=(i < n_rest - 1))
        # dropout == identity (eval mode)
        if i < n_rest - 1:
            vfeat = virtual_mlp(pooled, vfeat, params["virtual_mlp"])

    # drop the zero lane-padding back to the logical emb_dim
    return post_conv[:, :D]


# --------------------------------------------------------------------------
if __name__ == "__main__":
    NUM_LAYER, EMB_DIM = 3, 32
    N, E, G = 16, 32, 2

    key = jax.random.PRNGKey(0)
    k_in, k_par = jax.random.split(key)
    k1, k2, k3, k4 = jax.random.split(k_in, 4)

    x_int = jax.random.randint(k1, (N, NUM_ATOM_FEATS), 0, ATOM_VOCAB, jnp.int32)
    edge_src = jax.random.randint(k2, (E,), 0, N, jnp.int32)
    edge_dst = jax.random.randint(k3, (E,), 0, N, jnp.int32)
    edge_index = jnp.stack([edge_src, edge_dst], axis=0)            # [2, E]
    edge_attr = jax.random.randint(k4, (E, NUM_BOND_FEATS), 0, BOND_VOCAB, jnp.int32)
    batch = jnp.concatenate([jnp.zeros(N // 2, jnp.int32),
                             jnp.ones(N - N // 2, jnp.int32)])       # [N], 2 graphs

    params = init_params(k_par, NUM_LAYER, EMB_DIM, G)

    out = vgin_mol_head_encoder(x_int, edge_index, edge_attr, batch, params)
    out = jax.block_until_ready(out)
    assert out.shape == (N, EMB_DIM) and out.dtype == jnp.float32
    assert bool(jnp.all(jnp.isfinite(out)))
    print("KERNEL_OK")
</pallas_src>

<mosaic_0001>
module attributes {stable_mosaic.version = 11 : i64} {
  func.func @_gine_layer_kernel(%arg0: memref<32x1xi32, #tpu.memory_space<vmem>>, %arg1: memref<1x32xi32, #tpu.memory_space<vmem>>, %arg2: memref<16x1xi32, #tpu.memory_space<vmem>>, %arg3: memref<1x16xi32, #tpu.memory_space<vmem>>, %arg4: memref<16x128xf32, #tpu.memory_space<vmem>>, %arg5: memref<32x128xf32, #tpu.memory_space<vmem>>, %arg6: memref<2x128xf32, #tpu.memory_space<vmem>>, %arg7: memref<128x128xf32, #tpu.memory_space<vmem>>, %arg8: memref<1x128xf32, #tpu.memory_space<vmem>>, %arg9: memref<1x128xf32, #tpu.memory_space<vmem>>, %arg10: memref<1x128xf32, #tpu.memory_space<vmem>>, %arg11: memref<128x128xf32, #tpu.memory_space<vmem>>, %arg12: memref<1x128xf32, #tpu.memory_space<vmem>>, %arg13: memref<1x128xf32, #tpu.memory_space<vmem>>, %arg14: memref<1x128xf32, #tpu.memory_space<vmem>>, %arg15: memref<1x1xf32, #tpu.memory_space<smem>>, %arg16: memref<16x128xf32, #tpu.memory_space<vmem>>, %arg17: memref<2x128xf32, #tpu.memory_space<vmem>>) attributes {dimension_semantics = [], scalar_prefetch = 0 : i64, scratch_operands = 0 : i64, tpu.core_type = #tpu.core_type<tc>} {
    %c0 = arith.constant 0 : index
    %c0_0 = arith.constant 0 : index
    %0 = vector.load %arg4[%c0, %c0_0] : memref<16x128xf32, #tpu.memory_space<vmem>>, vector<16x128xf32>
    %1 = tpu.iota {dimensions = array<i32: 1>} : vector<32x16xi32>
    %c0_1 = arith.constant 0 : index
    %c0_2 = arith.constant 0 : index
    %2 = vector.load %arg0[%c0_1, %c0_2] : memref<32x1xi32, #tpu.memory_space<vmem>>, vector<32x1xi32>
    %3 = vector.broadcast %2 : vector<32x1xi32> to vector<32x16xi32>
    %4 = arith.cmpi eq, %1, %3 : vector<32x16xi32>
    %cst = arith.constant 1.000000e+00 : f32
    %cst_3 = arith.constant 0.000000e+00 : f32
    %5 = vector.broadcast %cst : f32 to vector<32x16xf32>
    %6 = vector.broadcast %cst_3 : f32 to vector<32x16xf32>
    %7 = arith.select %4, %5, %6 : vector<32x16xi1>, vector<32x16xf32>
    %cst_4 = arith.constant dense<0.000000e+00> : vector<32x128xf32>
    %8 = tpu.matmul %7, %0, %cst_4 {dimension_numbers = #tpu.dot_dimension_numbers<[1], [0], [0], [1], [0, 0, 1, 1], [], []>} : vector<32x16xf32>, vector<16x128xf32>, vector<32x128xf32> -> vector<32x128xf32>
    %c0_5 = arith.constant 0 : index
    %c0_6 = arith.constant 0 : index
    %9 = vector.load %arg5[%c0_5, %c0_6] : memref<32x128xf32, #tpu.memory_space<vmem>>, vector<32x128xf32>
    %10 = arith.addf %8, %9 : vector<32x128xf32>
    %cst_7 = arith.constant 0.000000e+00 : f32
    %11 = vector.broadcast %cst_7 : f32 to vector<32x128xf32>
    %12 = arith.maximumf %10, %11 : vector<32x128xf32>
    %13 = tpu.iota {dimensions = array<i32: 0>} : vector<16x32xi32>
    %c0_8 = arith.constant 0 : index
    %c0_9 = arith.constant 0 : index
    %14 = vector.load %arg1[%c0_8, %c0_9] : memref<1x32xi32, #tpu.memory_space<vmem>>, vector<1x32xi32>
    %15 = vector.broadcast %14 : vector<1x32xi32> to vector<16x32xi32>
    %16 = arith.cmpi eq, %13, %15 : vector<16x32xi32>
    %cst_10 = arith.constant 1.000000e+00 : f32
    %cst_11 = arith.constant 0.000000e+00 : f32
    %17 = vector.broadcast %cst_10 : f32 to vector<16x32xf32>
    %18 = vector.broadcast %cst_11 : f32 to vector<16x32xf32>
    %19 = arith.select %16, %17, %18 : vector<16x32xi1>, vector<16x32xf32>
    %cst_12 = arith.constant dense<0.000000e+00> : vector<16x128xf32>
    %20 = tpu.matmul %19, %12, %cst_12 {dimension_numbers = #tpu.dot_dimension_numbers<[1], [0], [0], [1], [0, 0, 1, 1], [], []>} : vector<16x32xf32>, vector<32x128xf32>, vector<16x128xf32> -> vector<16x128xf32>
    %c0_13 = arith.constant 0 : index
    %c0_14 = arith.constant 0 : index
    %21 = memref.load %arg15[%c0_13, %c0_14] : memref<1x1xf32, #tpu.memory_space<smem>>
    %cst_15 = arith.constant 1.000000e+00 : f32
    %22 = arith.addf %cst_15, %21 : f32
    %23 = vector.broadcast %22 : f32 to vector<16x128xf32>
    %24 = arith.mulf %23, %0 : vector<16x128xf32>
    %25 = arith.addf %24, %20 : vector<16x128xf32>
    %c0_16 = arith.constant 0 : index
    %c0_17 = arith.constant 0 : index
    %26 = vector.load %arg7[%c0_16, %c0_17] : memref<128x128xf32, #tpu.memory_space<vmem>>, vector<128x128xf32>
    %cst_18 = arith.constant dense<0.000000e+00> : vector<16x128xf32>
    %27 = tpu.matmul %25, %26, %cst_18 {dimension_numbers = #tpu.dot_dimension_numbers<[1], [0], [0], [1], [0, 0, 1, 1], [], []>} : vector<16x128xf32>, vector<128x128xf32>, vector<16x128xf32> -> vector<16x128xf32>
    %c0_19 = arith.constant 0 : index
    %c0_20 = arith.constant 0 : index
    %28 = vector.load %arg8[%c0_19, %c0_20] : memref<1x128xf32, #tpu.memory_space<vmem>>, vector<1x128xf32>
    %29 = vector.broadcast %28 : vector<1x128xf32> to vector<16x128xf32>
    %30 = arith.addf %27, %29 : vector<16x128xf32>
    %c0_21 = arith.constant 0 : index
    %c0_22 = arith.constant 0 : index
    %31 = vector.load %arg9[%c0_21, %c0_22] : memref<1x128xf32, #tpu.memory_space<vmem>>, vector<1x128xf32>
    %32 = vector.broadcast %31 : vector<1x128xf32> to vector<16x128xf32>
    %33 = arith.mulf %30, %32 : vector<16x128xf32>
    %c0_23 = arith.constant 0 : index
    %c0_24 = arith.constant 0 : index
    %34 = vector.load %arg10[%c0_23, %c0_24] : memref<1x128xf32, #tpu.memory_space<vmem>>, vector<1x128xf32>
    %35 = vector.broadcast %34 : vector<1x128xf32> to vector<16x128xf32>
    %36 = arith.addf %33, %35 : vector<16x128xf32>
    %cst_25 = arith.constant 0.000000e+00 : f32
    %37 = vector.broadcast %cst_25 : f32 to vector<16x128xf32>
    %38 = arith.maximumf %36, %37 : vector<16x128xf32>
    %c0_26 = arith.constant 0 : index
    %c0_27 = arith.constant 0 : index
    %39 = vector.load %arg11[%c0_26, %c0_27] : memref<128x128xf32, #tpu.memory_space<vmem>>, vector<128x128xf32>
    %cst_28 = arith.constant dense<0.000000e+00> : vector<16x128xf32>
    %40 = tpu.matmul %38, %39, %cst_28 {dimension_numbers = #tpu.dot_dimension_numbers<[1], [0], [0], [1], [0, 0, 1, 1], [], []>} : vector<16x128xf32>, vector<128x128xf32>, vector<16x128xf32> -> vector<16x128xf32>
    %c0_29 = arith.constant 0 : index
    %c0_30 = arith.constant 0 : index
    %41 = vector.load %arg12[%c0_29, %c0_30] : memref<1x128xf32, #tpu.memory_space<vmem>>, vector<1x128xf32>
    %42 = vector.broadcast %41 : vector<1x128xf32> to vector<16x128xf32>
    %43 = arith.addf %40, %42 : vector<16x128xf32>
    %c0_31 = arith.constant 0 : index
    %c0_32 = arith.constant 0 : index
    %44 = vector.load %arg13[%c0_31, %c0_32] : memref<1x128xf32, #tpu.memory_space<vmem>>, vector<1x128xf32>
    %45 = vector.broadcast %44 : vector<1x128xf32> to vector<16x128xf32>
    %46 = arith.mulf %43, %45 : vector<16x128xf32>
    %c0_33 = arith.constant 0 : index
    %c0_34 = arith.constant 0 : index
    %47 = vector.load %arg14[%c0_33, %c0_34] : memref<1x128xf32, #tpu.memory_space<vmem>>, vector<1x128xf32>
    %48 = vector.broadcast %47 : vector<1x128xf32> to vector<16x128xf32>
    %49 = arith.addf %46, %48 : vector<16x128xf32>
    %cst_35 = arith.constant 0.000000e+00 : f32
    %50 = vector.broadcast %cst_35 : f32 to vector<16x128xf32>
    %51 = arith.maximumf %49, %50 : vector<16x128xf32>
    %c0_36 = arith.constant 0 : index
    %c0_37 = arith.constant 0 : index
    %52 = vector.load %arg16[%c0_36, %c0_37] : memref<16x128xf32, #tpu.memory_space<vmem>>, vector<16x128xf32>
    tpu.vector_store %arg16[%c0_36, %c0_37], %51 {strides = array<i32>} : memref<16x128xf32, #tpu.memory_space<vmem>>, vector<16x128xf32>,
    %53 = tpu.iota {dimensions = array<i32: 0>} : vector<2x16xi32>
    %c0_38 = arith.constant 0 : index
    %c0_39 = arith.constant 0 : index
    %54 = vector.load %arg3[%c0_38, %c0_39] : memref<1x16xi32, #tpu.memory_space<vmem>>, vector<1x16xi32>
    %55 = vector.broadcast %54 : vector<1x16xi32> to vector<2x16xi32>
    %56 = arith.cmpi eq, %53, %55 : vector<2x16xi32>
    %cst_40 = arith.constant 1.000000e+00 : f32
    %cst_41 = arith.constant 0.000000e+00 : f32
    %57 = vector.broadcast %cst_40 : f32 to vector<2x16xf32>
    %58 = vector.broadcast %cst_41 : f32 to vector<2x16xf32>
    %59 = arith.select %56, %57, %58 : vector<2x16xi1>, vector<2x16xf32>
    %cst_42 = arith.constant dense<0.000000e+00> : vector<2x128xf32>
    %60 = tpu.matmul %59, %51, %cst_42 {dimension_numbers = #tpu.dot_dimension_numbers<[1], [0], [0], [1], [0, 0, 1, 1], [], []>} : vector<2x16xf32>, vector<16x128xf32>, vector<2x128xf32> -> vector<2x128xf32>
    %c0_43 = arith.constant 0 : index
    %c0_44 = arith.constant 0 : index
    %61 = vector.load %arg17[%c0_43, %c0_44] : memref<2x128xf32, #tpu.memory_space<vmem>>, vector<2x128xf32>
    tpu.vector_store %arg17[%c0_43, %c0_44], %60 {strides = array<i32>} : memref<2x128xf32, #tpu.memory_space<vmem>>, vector<2x128xf32>,
    return
  }
}

</mosaic_0001>

<bundles_post_ra>
// kernel: tpu_custom_call.1
= control target key start
LH: loop header
LB: loop body
LE: loop exit
PB: predicated region body
PF: predicated region fallthrough
CT: control target
= control target key end

     0   :  { %s1148_s0 = inlined_call_operand.vmem [shape: s32[32,1], index: 0, kind: input, shape index: {}]   ;;  %s1149_s1 = inlined_call_operand.vmem [shape: s32[1,32], index: 1, kind: input, shape index: {}]   ;;  %s1150_s2 = inlined_call_operand.vmem [shape: s32[16,1], index: 2, kind: input, shape index: {}]   ;;  %s1151_s3 = inlined_call_operand.vmem [shape: s32[1,16], index: 3, kind: input, shape index: {}]   ;;  %s1152_s4 = inlined_call_operand.vmem [shape: f32[16,128], index: 4, kind: input, shape index: {}]   ;;  %s1153_s5 = inlined_call_operand.vmem [shape: f32[32,128], index: 5, kind: input, shape index: {}]   ;;  %s1154_s6 = inlined_call_operand.vmem [shape: f32[2,128], index: 6, kind: input, shape index: {}]   ;;  %s1155_s7 = inlined_call_operand.hbm [shape: f32[128,128], index: 7, kind: input, shape index: {}]   ;;  %s1156_s8 = inlined_call_operand.vmem [shape: f32[1,128], index: 8, kind: input, shape index: {}]   ;;  %s1157_s9 = inlined_call_operand.vmem [shape: f32[1,128], index: 9, kind: input, shape index: {}]   ;;  %s1158_s10 = inlined_call_operand.vmem [shape: f32[1,128], index: 10, kind: input, shape index: {}]   ;;  %s1159_s11 = inlined_call_operand.hbm [shape: f32[128,128], index: 11, kind: input, shape index: {}]   ;;  %s1160_s12 = inlined_call_operand.vmem [shape: f32[1,128], index: 12, kind: input, shape index: {}]   ;;  %s1161_s13 = inlined_call_operand.vmem [shape: f32[1,128], index: 13, kind: input, shape index: {}]   ;;  %s1162_s14 = inlined_call_operand.vmem [shape: f32[1,128], index: 14, kind: input, shape index: {}]   ;;  %s1163_s15 = inlined_call_operand.<no memory space> [shape: f32[1,1], index: 15, kind: input, shape index: {}]   ;;  %s1164_s16 = inlined_call_operand.hbm [shape: f32[16,128], index: 16, kind: output, shape index: {0}]   ;;  %s1165_s17 = inlined_call_operand.hbm [shape: f32[2,128], index: 17, kind: output, shape index: {1}]  }
   0x1   :  { %1167 = sst [smem:[#allocation15_spill]] %s1148_s0 }
   0x2   :  { %1168 = sst [smem:[#allocation16_spill]] %s1149_s1 }
   0x3   :  { %24 = vsyncpa [#allocation4], 0 }
   0x4   :  { %25 = vsyncpa [#allocation7], 0 }
   0x5   :  { %26 = vsyncpa [#allocation5], 0 }
   0x6   :  { %27 = vsyncpa [#allocation10], 0  ;;  %s935_s2 = smov [#allocation3]  }
   0x7   :  { %s47_s22 = sshll.u32 %s935_s2, 4  ;;  %s48_s22 = int_to_ptr.vmem [resolvable:$true] %s47_s22 }
   0x8   :  { %s855_s23 = scalar_lea.vmem %s48_s22, 2048  ;;  %p860_p1 = scmp.lt.s32.totalorder %s48_s22, %s48_s22 }
   0x9   :  { %p856_p0 = scmp.ne.s32.totalorder %s48_s22, %s855_s23  ;;  %p861_p2 = scmp.lt.s32.totalorder %s855_s23, %s855_s23 }
   0xb   :  { %p862_p3 = por %p861_p2, %p860_p1 }
   0xd   :  { %p863_p4 = pnand %p862_p3, %p856_p0 }
   0xf   :  { %866 = shalt.err (!%p863_p4)
}
  0x10   :  { %s936_s24 = smov 128   ;;  %s937_s25 = smov 8  }
  0x11   :  { %53 = dma.hbm_to_vmem [thread:$0]  %s1155_s7, 2048, %s48_s22, [#allocation4], %s936_s24, %s936_s24, %s937_s25  }
  0x12   :  { %s938_s28 = smov [#allocation6]  }
  0x13   :  { %s65_s0 = sshll.u32 %s938_s28, 4  ;;  %s66_s0 = int_to_ptr.vmem [resolvable:$true] %s65_s0 }
  0x14   :  { %s875_s6 = scalar_lea.vmem %s66_s0, 2048  ;;  %p880_p6 = scmp.lt.s32.totalorder %s66_s0, %s66_s0 }
  0x15   :  { %p876_p5 = scmp.ne.s32.totalorder %s66_s0, %s875_s6  ;;  %p881_p7 = scmp.lt.s32.totalorder %s875_s6, %s875_s6 }
  0x17   :  { %p882_p8 = por %p881_p7, %p880_p6 }
  0x19   :  { %p883_p9 = pnand %p882_p8, %p876_p5 }
  0x1b   :  { %886 = shalt.err (!%p883_p9)
}
  0x1c   :  { %71 = dma.hbm_to_vmem [thread:$0]  %s1159_s11, 2048, %s66_s0, [#allocation7], %s936_s24, %s936_s24, %s937_s25  }
  0x1d   :  { %927 = dma.done.wait [#allocation4], 2048  }
  0x1e   :  { %928 = vsyncadd [#allocation4], 4294965248 }
  0x1f   :  { %929 = dma.done.wait [#allocation7], 2048  }
  0x20   :  { %930 = vsyncadd [#allocation7], 4294965248  ;;  %v939_v0 = vmov 0   ;;  %s1169_s18 = sld [smem:[#allocation15_spill]]  ;;  %v1055_v3 = vld [vmem:[%s1152_s4 + $0x8] sm:$0xff]  ;;  %v1060_v4 = vld [vmem:[%s1152_s4] sm:$0xff]  ;;  %v88_v7 = vlaneseq }
  0x21   :  { %846 = vset.pattern.permute.xlu1 %v939_v0  ;;  %845 = vset.pattern.permute.xlu0 %v939_v0  ;;  %vm118_vm0 = vcmask 130048   ;;  %v940_v11 = vmov 0.0   ;;  %s1170_s6 = sld [smem:[#allocation16_spill]]  ;;  %vm232_vm6 = vcmask 261120   ;;  %v336_v21 = vld [vmem:[#allocation3 + $0x78] sm:$0xff]  ;;  %v335_v22 = vld [vmem:[#allocation3 + $0x70] sm:$0xff] }
  0x22   :  { %738 = vmatprep.subr.mxu0 %v1055_v3  ;;  %v89_v8 = vand.u32 127, %v88_v7  ;;  %v1080_v18 = vshrl.u32 %v88_v7, 7  ;;  %v334_v23 = vld [vmem:[#allocation3 + $0x68] sm:$0xff]  ;;  %v333_v24 = vld [vmem:[#allocation3 + $0x60] sm:$0xff]  ;;  %v332_v25 = vld [vmem:[#allocation3 + $0x58] sm:$0xff]  ;;  %s315_s11 = sadd.f32 1.0, %s1163_s15 }
  0x23   :  { %739 = vmatpush3.msra.mxu0 %v1055_v3  ;;  %v331_v26 = vld [vmem:[#allocation3 + $0x50] sm:$0xff]  ;;  %v330_v27 = vld [vmem:[#allocation3 + $0x48] sm:$0xff]  ;;  %v329_v28 = vld [vmem:[#allocation3 + $0x40] sm:$0xff]  ;;  %vm941_vm8 = vmmov 0  }
  0x24   :  { %740 = vmatprep.subr.mxu0 %v1060_v4  ;;  %v328_v29 = vld [vmem:[#allocation3 + $0x38] sm:$0xff]  ;;  %v327_v30 = vld [vmem:[#allocation3 + $0x30] sm:$0xff]  ;;  %v326_v31 = vld [vmem:[#allocation3 + $0x28] sm:$0xff]  ;;  %v222_v46 = vadd.s32 8, %v1080_v18 }
  0x25   :  { %741 = vmatpush3.msra.mxu0 %v1060_v4  ;;  %v325_v32 = vld [vmem:[#allocation3 + $0x20] sm:$0xff]  ;;  %v324_v33 = vld [vmem:[#allocation3 + $0x18] sm:$0xff]  ;;  %v115_v37 = vld [vmem:[%s1153_s5 + $0x8] sm:$0xff] }
  0x26   :  { %v92_v1 = vld [vmem:[%s1169_s18 + $0x10] sm:$0xff]  ;;  %v90_v2 = vld [vmem:[%s1169_s18] sm:$0xff]  ;;  %v93_v5 = vld [vmem:[%s1169_s18 + $0x18] sm:$0xff]  ;;  %759 = vmatprep.subr.mxu0 %v336_v21 }
  0x27   :  { %101 = vperm.xlu1 %846, %v92_v1   ;;  %95 = vperm.xlu0 %845, %v90_v2   ;;  %v91_v6 = vld [vmem:[%s1169_s18 + $0x8] sm:$0xff]  ;;  %v1085_v19 = vld [vmem:[%s1170_s6] ss:$0 sm:$0xff]  ;;  %v117_v36 = vld [vmem:[%s1153_s5 + $0x18] sm:$0xff]  ;;  %v316_v1 = vstv %s315_s11 }
  0x28   :  { %vm228_vm5 = vcmp.eq.s32.totalorder %v1080_v18, %v1085_v19  ;;  %v116_v39 = vld [vmem:[%s1153_s5 + $0x10] sm:$0xff]  ;;  %v114_v41 = vld [vmem:[%s1153_s5] sm:$0xff]  ;;  %vm229_vm7 = vcmp.eq.s32.totalorder %v222_v46, %v1085_v19  ;;  %v322_v53 = vld [vmem:[#allocation3 + $0x8] sm:$0xff]  ;;  %v317_v2 = vmul.f32 %v316_v1, %v1060_v4 }
  0x29   :  { %v230_v20 = vsel %vm228_vm5, 1.0, %v940_v11  ;;  %v231_v51 = vsel %vm229_vm7, 1.0, %v940_v11  ;;  %v323_v52 = vld [vmem:[#allocation3 + $0x10] sm:$0xff]  ;;  %v321_v54 = vld [vmem:[#allocation3] sm:$0xff]  ;;  %v454_v55 = vld [vmem:[#allocation6 + $0x78] sm:$0xff] }
  0x2a   :  { %756 = vmatprep.mubr.msk.f32.mxu1 %vm232_vm6, %v230_v20  ;;  %v453_v56 = vld [vmem:[#allocation6 + $0x70] sm:$0xff]  ;;  %v452_v57 = vld [vmem:[#allocation6 + $0x68] sm:$0xff]  ;;  %v451_v58 = vld [vmem:[#allocation6 + $0x60] sm:$0xff] }
  0x2b   :  { %104 = vperm.xlu1 %846, %v93_v5   ;;  %98 = vperm.xlu0 %845, %v91_v6   ;;  %v450_v59 = vld [vmem:[#allocation6 + $0x58] sm:$0xff]  ;;  %v449_v60 = vld [vmem:[#allocation6 + $0x50] sm:$0xff]  ;;  %v448_v61 = vld [vmem:[#allocation6 + $0x48] sm:$0xff]  ;;  %v318_v6 = vmul.f32 %v316_v1, %v1055_v3 }
  0x2c   :  { %v447_v62 = vld [vmem:[#allocation6 + $0x40] sm:$0xff]  ;;  %v446_v63 = vld [vmem:[#allocation6 + $0x38] sm:$0xff]  ;;  %v445_v0 = vld [vmem:[#allocation6 + $0x30] sm:$0xff] }
  0x2d   :  { %v440_v4 = vld [vmem:[#allocation6 + $0x8] sm:$0xff]  ;;  %v679_v3 = vld [vmem:[%s1156_s8] ss:$0 sm:$0xff] }
  0xa2   :  { %v102_v9 = vpop.permute.xlu1 %101  ;;  %v96_v10 = vpop.permute.xlu0 %95 }
  0xa3   :  { %vm106_vm1 = vcmp.eq.s32.totalorder %v89_v8, %v96_v10  ;;  %vm108_vm2 = vcmp.eq.s32.totalorder %v89_v8, %v102_v9  ;;  %v444_v10 = vld [vmem:[#allocation6 + $0x28] sm:$0xff] }
  0xa4   :  { %v110_v12 = vsel %vm106_vm1, 1.0, %v940_v11  ;;  %v112_v15 = vsel %vm108_vm2, 1.0, %v940_v11 }
  0xa5   :  { %742 = vmatprep.mubr.msk.f32.mxu0 %vm118_vm0, %v110_v12  ;;  %v443_v12 = vld [vmem:[#allocation6 + $0x20] sm:$0xff] }
  0xa6   :  { %v105_v13 = vpop.permute.xlu1 %104  ;;  %v99_v14 = vpop.permute.xlu0 %98 }
  0xa7   :  { %vm107_vm3 = vcmp.eq.s32.totalorder %v89_v8, %v99_v14  ;;  %vm109_vm4 = vcmp.eq.s32.totalorder %v89_v8, %v105_v13  ;;  %v442_v13 = vld [vmem:[#allocation6 + $0x18] sm:$0xff]  ;;  %v441_v14 = vld [vmem:[#allocation6 + $0x10] sm:$0xff] }
  0xa8   :  { %v111_v16 = vsel %vm107_vm3, 1.0, %v940_v11  ;;  %v113_v17 = vsel %vm109_vm4, 1.0, %v940_v11 }
  0xa9   :  { %743 = vmatmul.mubr.msk.f32.vlgmr.msra.gmra.mxu0 %vm118_vm0, %v111_v16 }
  0xaa   :  { %745 = vmatprep.mubr.msk.f32.mxu0 %vm118_vm0, %v112_v15  ;;  %760 = vmatpush3.msra.mxu0 %v336_v21  ;;  %v439_v15 = vld [vmem:[#allocation6] sm:$0xff] }
  0xab   :  { %761 = vmatprep.subr.mxu0 %v335_v22 }
  0xac   :  { %762 = vmatpush3.msra.mxu0 %v335_v22  ;;  %v681_v22 = vld [vmem:[%s1158_s10] ss:$0 sm:$0xff] }
  0xad   :  { %746 = vmatmul.mubr.msk.f32.gmra.mxu0 %vm118_vm0, %v113_v17  ;;  %763 = vmatprep.subr.mxu0 %v334_v23  ;;  %v680_v17 = vld [vmem:[%s1157_s9] ss:$0 sm:$0xff] }
  0xae   :  { %764 = vmatpush3.msra.mxu0 %v334_v23 }
  0xaf   :  { %765 = vmatprep.subr.mxu0 %v333_v24 }
  0xb0   :  { %766 = vmatpush3.msra.mxu0 %v333_v24 }
  0xb1   :  { %767 = vmatprep.subr.mxu0 %v332_v25 }
  0xb2   :  { %768 = vmatpush3.msra.mxu0 %v332_v25 }
  0xb3   :  { %769 = vmatprep.subr.mxu0 %v331_v26 }
  0xb4   :  { %770 = vmatpush3.msra.mxu0 %v331_v26 }
  0xb5   :  { %771 = vmatprep.subr.mxu0 %v330_v27 }
  0xb6   :  { %772 = vmatpush3.msra.mxu0 %v330_v27 }
  0xb7   :  { %773 = vmatprep.subr.mxu0 %v329_v28 }
  0xb8   :  { %774 = vmatpush3.msra.mxu0 %v329_v28 }
  0xb9   :  { %775 = vmatprep.subr.mxu0 %v328_v29 }
  0xba   :  { %776 = vmatpush3.msra.mxu0 %v328_v29  ;;  %v682_v29 = vld [vmem:[%s1160_s12] ss:$0 sm:$0xff]  ;;  %s942_s12 = smov [#allocation8]  }
  0xbb   :  { %777 = vmatprep.subr.mxu0 %v327_v30 }
  0xbc   :  { %778 = vmatpush3.msra.mxu0 %v327_v30 }
  0xbd   :  { %779 = vmatprep.subr.mxu0 %v326_v31 }
  0xbe   :  { %780 = vmatpush3.msra.mxu0 %v326_v31  ;;  %v683_v31 = vld [vmem:[%s1161_s13] ss:$0 sm:$0xff]  ;;  %s645_s13 = sshll.u32 %s942_s12, 4  ;;  %s646_s13 = int_to_ptr.vmem [resolvable:$true] %s645_s13 }
  0xbf   :  { %781 = vmatprep.subr.mxu0 %v325_v32  ;;  %p892_p11 = scmp.lt.s32.totalorder %s646_s13, %s646_s13 }
  0xc0   :  { %782 = vmatpush3.msra.mxu0 %v325_v32 }
  0xc1   :  { %783 = vmatprep.subr.mxu0 %v324_v33 }
  0xc2   :  { %784 = vmatpush3.msra.mxu0 %v324_v33  ;;  %v684_v33 = vld [vmem:[%s1162_s14] ss:$0 sm:$0xff] }
  0xc3   :  { %785 = vmatprep.subr.mxu0 %v323_v52 }
  0xc4   :  { %786 = vmatpush3.msra.mxu0 %v323_v52 }
  0xc5   :  { %787 = vmatprep.subr.mxu0 %v322_v53 }
  0xc6   :  { %788 = vmatpush3.msra.mxu0 %v322_v53 }
  0xc7   :  { %789 = vmatprep.subr.mxu0 %v321_v54 }
  0xc8   :  { %790 = vmatpush3.msra.mxu0 %v321_v54 }
  0xc9   :  { %829 = vmatprep.subr.mxu0 %v940_v11 }
 0x169   :  { %v744_v34 = vpop.f32.mrf.mxu0 }
 0x16a   :  { %v203_v43 = vadd.f32 %v744_v34, %v115_v37  ;;  %v685_v37 = vld [vmem:[%s1151_s3] ss:$0 sm:$0xff]  ;;  %s887_s3 = scalar_lea.vmem %s646_s13, 256 }
 0x16b   :  { %v197_v35 = vpop.f32.mrf.mxu0  ;;  %vm564_vm9 = vcmp.eq.s32.totalorder %v1080_v18, %v685_v37  ;;  %p888_p10 = scmp.ne.s32.totalorder %s646_s13, %s887_s3  ;;  %p893_p12 = scmp.lt.s32.totalorder %s887_s3, %s887_s3 }
 0x16c   :  { %v198_v47 = vadd.f32 %v197_v35, %v114_v41  ;;  %v217_v49 = vmax.f32 %v203_v43, 0.0  ;;  %v565_v43 = vsel %vm564_vm9, 1.0, %v940_v11 }
 0x16d   :  { %v747_v38 = vpop.f32.mrf.mxu0  ;;  %p894_p13 = por %p893_p12, %p892_p11 }
 0x16e   :  { %v213_v40 = vadd.f32 %v747_v38, %v117_v36  ;;  %v216_v50 = vmax.f32 %v198_v47, 0.0 }
 0x16f   :  { %v207_v42 = vpop.f32.mrf.mxu0  ;;  %p895_p0 = pnand %p894_p13, %p888_p10 }
 0x170   :  { %v219_v44 = vmax.f32 %v213_v40, 0.0  ;;  %v208_v45 = vadd.f32 %v207_v42, %v116_v39 }
 0x172   :  { %v218_v48 = vmax.f32 %v208_v45, 0.0  ;;  %748 = vmatprep.subr.mxu1 %v219_v44 }
 0x173   :  { %749 = vmatpush3.msra.mxu1 %v219_v44 }
 0x174   :  { %750 = vmatprep.subr.mxu1 %v218_v48 }
 0x175   :  { %751 = vmatpush3.msra.mxu1 %v218_v48 }
 0x176   :  { %752 = vmatprep.subr.mxu1 %v217_v49 }
 0x177   :  { %753 = vmatpush3.msra.mxu1 %v217_v49 }
 0x178   :  { %754 = vmatprep.subr.mxu1 %v216_v50 }
 0x179   :  { %755 = vmatpush3.msra.mxu1 %v216_v50 }
 0x17a   :  { %757 = vmatmul.mubr.msk.f32.vlgmr.msra.gmra.mxu1 %vm232_vm6, %v231_v51  ;;  %794 = vmatprep.subr.mxu1 %v454_v55 }
 0x17b   :  { %795 = vmatpush3.msra.mxu1 %v454_v55 }
 0x17c   :  { %796 = vmatprep.subr.mxu1 %v453_v56 }
 0x17d   :  { %797 = vmatpush3.msra.mxu1 %v453_v56 }
 0x17e   :  { %798 = vmatprep.subr.mxu1 %v452_v57 }
 0x17f   :  { %799 = vmatpush3.msra.mxu1 %v452_v57 }
 0x180   :  { %800 = vmatprep.subr.mxu1 %v451_v58 }
 0x181   :  { %801 = vmatpush3.msra.mxu1 %v451_v58 }
 0x182   :  { %802 = vmatprep.subr.mxu1 %v450_v59 }
 0x183   :  { %803 = vmatpush3.msra.mxu1 %v450_v59 }
 0x184   :  { %804 = vmatprep.subr.mxu1 %v449_v60 }
 0x185   :  { %805 = vmatpush3.msra.mxu1 %v449_v60 }
 0x186   :  { %806 = vmatprep.subr.mxu1 %v448_v61 }
 0x187   :  { %807 = vmatpush3.msra.mxu1 %v448_v61 }
 0x188   :  { %808 = vmatprep.subr.mxu1 %v447_v62 }
 0x189   :  { %809 = vmatpush3.msra.mxu1 %v447_v62 }
 0x18a   :  { %810 = vmatprep.subr.mxu1 %v446_v63 }
 0x18b   :  { %811 = vmatpush3.msra.mxu1 %v446_v63 }
 0x18c   :  { %812 = vmatprep.subr.mxu1 %v445_v0 }
 0x18d   :  { %813 = vmatpush3.msra.mxu1 %v445_v0 }
 0x18e   :  { %814 = vmatprep.subr.mxu1 %v444_v10 }
 0x18f   :  { %815 = vmatpush3.msra.mxu1 %v444_v10 }
 0x190   :  { %816 = vmatprep.subr.mxu1 %v443_v12 }
 0x191   :  { %817 = vmatpush3.msra.mxu1 %v443_v12 }
 0x192   :  { %818 = vmatprep.subr.mxu1 %v442_v13 }
 0x193   :  { %819 = vmatpush3.msra.mxu1 %v442_v13 }
 0x194   :  { %820 = vmatprep.subr.mxu1 %v441_v14 }
 0x195   :  { %821 = vmatpush3.msra.mxu1 %v441_v14 }
 0x196   :  { %822 = vmatprep.subr.mxu1 %v440_v4 }
 0x197   :  { %823 = vmatpush3.msra.mxu1 %v440_v4 }
 0x198   :  { %824 = vmatprep.subr.mxu1 %v439_v15 }
 0x199   :  { %825 = vmatpush3.msra.mxu1 %v439_v15 }
 0x23a   :  { %v758_v5 = vpop.f32.mrf.mxu1 }
 0x23b   :  { %v320_v9 = vadd.f32 %v758_v5, %v318_v6 }
 0x23c   :  { %v305_v7 = vpop.f32.mrf.mxu1 }
 0x23d   :  { %v319_v8 = vadd.f32 %v317_v2, %v305_v7 }
 0x23f   :  { %791 = vmatprep.mubr.f32.mxu0 %v319_v8 }
 0x240   :  { %792 = vmatmul.mubr.f32.vlgmr.msra.gmra.mxu0 %v320_v9 }
 0x241   :  { %833 = vmatprep.mubr.msk.f32.mxu0 %vm941_vm8, %v940_v11 }
 0x300   :  { %v793_v16 = vpop.f32.mrf.mxu0 }
 0x301   :  { %v416_v19 = vadd.f32 %v793_v16, %v679_v3 }
 0x302   :  { %v410_v20 = vpop.f32.mrf.mxu0 }
 0x303   :  { %v427_v21 = vmul.f32 %v680_v17, %v416_v19  ;;  %v411_v23 = vadd.f32 %v679_v3, %v410_v20 }
 0x305   :  { %v426_v24 = vmul.f32 %v680_v17, %v411_v23  ;;  %v436_v25 = vadd.f32 %v681_v22, %v427_v21 }
 0x307   :  { %v435_v26 = vadd.f32 %v681_v22, %v426_v24  ;;  %v438_v28 = vmax.f32 %v436_v25, 0.0 }
 0x309   :  { %v437_v27 = vmax.f32 %v435_v26, 0.0 }
 0x30b   :  { %826 = vmatprep.mubr.f32.mxu1 %v437_v27 }
 0x30c   :  { %827 = vmatmul.mubr.f32.vlgmr.msra.gmra.mxu1 %v438_v28 }
 0x3cc   :  { %v828_v30 = vpop.f32.mrf.mxu1 }
 0x3cd   :  { %v534_v32 = vadd.f32 %v828_v30, %v682_v29 }
 0x3ce   :  { %v528_v34 = vpop.f32.mrf.mxu1 }
 0x3cf   :  { %v545_v35 = vmul.f32 %v683_v31, %v534_v32  ;;  %v529_v36 = vadd.f32 %v682_v29, %v528_v34 }
 0x3d1   :  { %v554_v38 = vadd.f32 %v684_v33, %v545_v35  ;;  %v544_v39 = vmul.f32 %v683_v31, %v529_v36 }
 0x3d3   :  { %v556_v40 = vmax.f32 %v554_v38, 0.0  ;;  %v553_v41 = vadd.f32 %v684_v33, %v544_v39 }
 0x3d5   :  { %558 = vst [vmem:[#allocation8 + $0x8] sm:$0xff] %v556_v40  ;;  %v555_v42 = vmax.f32 %v553_v41, 0.0  ;;  %830 = vmatpush3.msra.mxu0 %v556_v40 }
 0x3d6   :  { %831 = vmatprep.subr.mxu0 %v940_v11 }
 0x3d7   :  { %557 = vst [vmem:[#allocation8] sm:$0xff] %v555_v42  ;;  %832 = vmatpush3.msra.mxu0 %v555_v42 }
 0x3d8   :  { %834 = vmatmul.mubr.msk.f32.vlgmr.msra.gmra.mxu0 %vm118_vm0, %v565_v43 }
 0x3d9   :  { %898 = shalt.err (!%p895_p0)
}
 0x3da   :  { %651 = dma.vmem_to_hbm [thread:$0]  %s646_s13, 256, %s1164_s16, [#allocation5], %s936_s24, %s936_s24, %s937_s25  }
 0x3db   :  { %s943_s1 = smov [#allocation9]  }
 0x3dc   :  { %s658_s18 = sshll.u32 %s943_s1, 4  ;;  %s659_s18 = int_to_ptr.vmem [resolvable:$true] %s658_s18 }
 0x3dd   :  { %s907_s19 = scalar_lea.vmem %s659_s18, 32  ;;  %p912_p2 = scmp.lt.s32.totalorder %s659_s18, %s659_s18 }
 0x3de   :  { %p908_p1 = scmp.ne.s32.totalorder %s659_s18, %s907_s19  ;;  %p913_p3 = scmp.lt.s32.totalorder %s907_s19, %s907_s19 }
 0x3e0   :  { %p914_p4 = por %p913_p3, %p912_p2 }
 0x3e2   :  { %p915_p5 = pnand %p914_p4, %p908_p1 }
 0x498   :  { %v635_v11 = vpop.f32.mrf.mxu0 }
 0x499   :  { %639 = vst [vmem:[#allocation9] sm:$0x3] %v635_v11 }
 0x49a   :  { %v835_v18 = vpop.f32.mrf.mxu0 }
 0x49b   :  { %918 = shalt.err (!%p915_p5)
}
 0x49c   :  { %661 = dma.vmem_to_hbm [thread:$0]  %s659_s18, 32, %s1165_s17, [#allocation10]  }
 0x49d   :  { %931 = dma.done.wait [#allocation5], 256  }
 0x49e   :  { %932 = vsyncadd [#allocation5], 4294967040 }
 0x49f   :  { %933 = dma.done.wait [#allocation10], 32  }
 0x4a0   :  { %934 = vsyncadd [#allocation10], 4294967264 }
 0x4a1   :  { %668 = vsyncpa [#allocation4], 1 }
 0x4a2   :  { %669 = vsyncpa [#allocation7], 1 }
 0x4a3   :  { %670 = vsyncpa [#allocation5], 1 }
 0x4a4   :  { %671 = vsyncpa [#allocation10], 1 }

</bundles_post_ra>
